<compile_context>
chip_gen: v6e
topology: v6e:2x2x1
jax: 0.10.0
libtpu: 0.0.40
codegen_flags: <defaults>
</compile_context>

<pallas_src>
import jax
import jax.numpy as jnp
from jax import lax
from jax.experimental import pallas as pl
from jax.experimental.pallas import tpu as pltpu

SMOOTH = 1.0
_LANES = 128
# Non-final row blocks must be a multiple of 32 rows so f32 (8), bf16 (16) and
# int8/uint8 (32) sublane packing all produce legal block tilings.
_ROW_ALIGN = 32
# Per-step combined (x block + t block) byte budget.  Double-buffered this is
# ~16 MiB of VMEM -> comfortably inside every generation once the scoped
# limit below is applied (v7x physical VMEM is only 64 MiB).
_STEP_BYTES_BUDGET = 8 * 1024 * 1024
_VMEM_LIMIT_BYTES = 40 * 1024 * 1024


def _make_dice_kernel(rows_per_step, total_rows, has_tail):
    """Builds the kernel for a fixed (static) row-block geometry."""

    def kernel(x_ref, t_ref, oi_ref, ou_ref):
        k = pl.program_id(1)

        @pl.when(k == 0)
        def _init():
            oi_ref[...] = jnp.zeros_like(oi_ref)
            ou_ref[...] = jnp.zeros_like(ou_ref)

        # Native-dtype DMA; all math in f32.
        x = x_ref[...].astype(jnp.float32)  # (rows_per_step, 128)
        t = t_ref[...].astype(jnp.float32)

        def accumulate(xv, tv):
            # Lane-partial reductions: reduce over the row (sublane) axis only,
            # keep 128 lane partials; the cross-lane reduce happens once outside.
            oi_ref[...] += jnp.sum(xv * tv, axis=0, keepdims=True)
            ou_ref[...] += jnp.sum(xv * xv + tv * tv, axis=0, keepdims=True)

        if has_tail:
            # Only the final reduction step can read past the real data; keep
            # the steady-state path mask-free so it stays HBM-bound.
            is_last = k == pl.num_programs(1) - 1

            @pl.when(jnp.logical_not(is_last))
            def _steady():
                accumulate(x, t)

            @pl.when(is_last)
            def _tail():
                valid = total_rows - k * rows_per_step
                row_ids = lax.broadcasted_iota(
                    jnp.int32, (rows_per_step, 1), 0)
                keep = row_ids < valid
                accumulate(jnp.where(keep, x, 0.0), jnp.where(keep, t, 0.0))
        else:
            accumulate(x, t)

    return kernel


def _prep(a):
    """Flatten to (B, D) without changing HBM width (except bool -> u8)."""
    if a.dtype == jnp.bool_:
        a = a.astype(jnp.uint8)       # avoid i1 blocks; still 1 byte/elem
    elif a.dtype == jnp.float64:
        a = a.astype(jnp.float32)     # TPU has no f64 vector path
    return a.reshape(a.shape[0], -1)


def dice_loss_pallas(inp, target, *, max_rows_per_step=None):
    assert inp.shape == target.shape
    B = inp.shape[0]
    x = _prep(inp)
    t = _prep(target)
    D = x.shape[1]

    # TODO(synk): when D % 128 != 0 this still pays one padded HBM copy of both
    # inputs; a column-grid variant consuming the raw (B, D) layout with an
    # in-kernel lane mask on the final partial 128-chunk would remove it.
    lane_pad = (-D) % _LANES
    if lane_pad:
        x = jnp.pad(x, ((0, 0), (0, lane_pad)))
        t = jnp.pad(t, ((0, 0), (0, lane_pad)))
    total_rows = (D + lane_pad) // _LANES
    x3 = x.reshape(B, total_rows, _LANES)   # free bitcast (128 | padded D)
    t3 = t.reshape(B, total_rows, _LANES)

    if max_rows_per_step is None:
        bytes_per_row = _LANES * (x3.dtype.itemsize + t3.dtype.itemsize)
        max_rows_per_step = max(
            _ROW_ALIGN,
            (_STEP_BYTES_BUDGET // bytes_per_row) // _ROW_ALIGN * _ROW_ALIGN)
    assert max_rows_per_step % _ROW_ALIGN == 0

    if total_rows <= max_rows_per_step:
        # Single step per sample; a full-extent row block is always legal.
        rows_per_step, n_steps, has_tail = total_rows, 1, False
    else:
        rows_per_step = max_rows_per_step
        n_steps = pl.cdiv(total_rows, rows_per_step)
        has_tail = (total_rows % rows_per_step) != 0

    kernel = _make_dice_kernel(rows_per_step, total_rows, has_tail)

    acc_shape = jax.ShapeDtypeStruct((B, 1, _LANES), jnp.float32)
    acc_spec = pl.BlockSpec((None, 1, _LANES), lambda b, k: (b, 0, 0))
    in_spec = pl.BlockSpec((None, rows_per_step, _LANES),
                           lambda b, k: (b, k, 0))

    n_elems = B * total_rows * _LANES
    cost = pl.CostEstimate(
        flops=5 * n_elems,
        transcendentals=0,
        bytes_accessed=n_elems * (x3.dtype.itemsize + t3.dtype.itemsize)
        + 2 * B * _LANES * 4,
    )

    # TODO(synk): on v7x (2 TensorCores), add a second "parallel" grid axis
    # splitting the row range so both cores stream HBM when B == 1.
    oi, ou = pl.pallas_call(
        kernel,
        out_shape=(acc_shape, acc_shape),
        grid_spec=pltpu.PrefetchScalarGridSpec(
            num_scalar_prefetch=0,
            grid=(B, n_steps),
            in_specs=[in_spec, in_spec],
            out_specs=[acc_spec, acc_spec],
        ),
        compiler_params=pltpu.CompilerParams(
            dimension_semantics=("parallel", "arbitrary"),
            vmem_limit_bytes=_VMEM_LIMIT_BYTES,
        ),
        cost_estimate=cost,
    )(x3, t3)

    # Tiny f32 epilogue: one cross-lane reduce per accumulator + dice formula.
    intersect = jnp.sum(oi, axis=(1, 2))   # (B,)
    union = jnp.sum(ou, axis=(1, 2))       # (B,)
    loss = 1.0 - (2.0 * intersect + SMOOTH) / (union + SMOOTH)
    return jnp.mean(loss)


def dice_loss_ref(inp, target):
    B = inp.shape[0]
    x = inp.reshape(B, -1).astype(jnp.float32)
    t = target.reshape(B, -1).astype(jnp.float32)
    intersect = jnp.sum(x * t, axis=1)
    union = jnp.sum(x * x, axis=1) + jnp.sum(t * t, axis=1)
    loss = 1.0 - (2.0 * intersect + SMOOTH) / (union + SMOOTH)
    return jnp.mean(loss)


if __name__ == "__main__":
    key = jax.random.PRNGKey(0)
    k1, k2, k3, k4, k5, k6 = jax.random.split(key, 6)

    # Primary test: NCHW float32, matching the PyTorch module's typical use.
    B, C, H, W = 2, 4, 16, 16
    inp = jax.nn.sigmoid(jax.random.normal(k1, (B, C, H, W), dtype=jnp.float32))
    tgt = (jax.random.uniform(k2, (B, C, H, W)) > 0.5).astype(jnp.float32)
    out = dice_loss_pallas(inp, tgt)
    jax.block_until_ready(out)
    ref = dice_loss_ref(inp, tgt)
    assert jnp.allclose(out, ref, rtol=1e-5, atol=1e-5), (out, ref)

    # Secondary test: bf16 inputs, multi-step reduction with a masked tail
    # (100 rows, 32-row blocks -> 4 steps, last step gated + masked).
    shape2 = (2, 100, 128)
    inp2 = jax.nn.sigmoid(jax.random.normal(k3, shape2)).astype(jnp.bfloat16)
    tgt2 = (jax.random.uniform(k4, shape2) > 0.5).astype(jnp.bfloat16)
    out2 = dice_loss_pallas(inp2, tgt2, max_rows_per_step=32)
    jax.block_until_ready(out2)
    ref2 = dice_loss_ref(inp2, tgt2)
    assert jnp.allclose(out2, ref2, rtol=1e-4, atol=1e-4), (out2, ref2)

    # Third test: native uint8 binary mask target (no wrapper-side f32 cast;
    # the cast to f32 happens inside the kernel).
    shape3 = (2, 1, 64, 64)
    inp3 = jax.nn.sigmoid(jax.random.normal(k5, shape3, dtype=jnp.float32))
    tgt3 = (jax.random.uniform(k6, shape3) > 0.5).astype(jnp.uint8)
    out3 = dice_loss_pallas(inp3, tgt3)
    jax.block_until_ready(out3)
    ref3 = dice_loss_ref(inp3, tgt3)
    assert jnp.allclose(out3, ref3, rtol=1e-5, atol=1e-5), (out3, ref3)

    print("KERNEL_OK")
</pallas_src>

<mosaic_0001>
module attributes {stable_mosaic.version = 11 : i64} {
  func.func @kernel(%arg0: i32, %arg1: i32, %arg2: memref<1x8x128xf32, #tpu.memory_space<vmem>>, %arg3: memref<1x8x128xf32, #tpu.memory_space<vmem>>, %arg4: memref<1x1x128xf32, #tpu.memory_space<vmem>>, %arg5: memref<1x1x128xf32, #tpu.memory_space<vmem>>) attributes {dimension_semantics = [#tpu.dimension_semantics<parallel>, #tpu.dimension_semantics<arbitrary>], iteration_bounds = array<i64: 2, 1>, scalar_prefetch = 0 : i64, scratch_operands = 0 : i64, tpu.core_type = #tpu.core_type<tc>, window_params = [{transform_indices = @transform_0, window_bounds = array<i64: 1, 8, 128>}, {transform_indices = @transform_1, window_bounds = array<i64: 1, 8, 128>}, {transform_indices = @transform_2, window_bounds = array<i64: 1, 1, 128>}, {transform_indices = @transform_3, window_bounds = array<i64: 1, 1, 128>}]} {
    %c0_i32 = arith.constant 0 : i32
    %0 = arith.cmpi eq, %arg1, %c0_i32 : i32
    %1 = arith.extui %0 : i1 to i32
    %c0_i32_0 = arith.constant 0 : i32
    %2 = arith.cmpi ne, %1, %c0_i32_0 : i32
    scf.if %2 {
      %cst_19 = arith.constant 0.000000e+00 : f32
      %27 = vector.broadcast %cst_19 : f32 to vector<1x128xf32>
      %c0_20 = arith.constant 0 : index
      %c0_21 = arith.constant 0 : index
      %c0_22 = arith.constant 0 : index
      %28 = vector.load %arg4[%c0_20, %c0_21, %c0_22] : memref<1x1x128xf32, #tpu.memory_space<vmem>>, vector<1x1x128xf32>
      %29 = vector.shape_cast %28 : vector<1x1x128xf32> to vector<1x128xf32>
      %30 = vector.shape_cast %27 : vector<1x128xf32> to vector<1x1x128xf32>
      tpu.vector_store %arg4[%c0_20, %c0_21, %c0_22], %30 {strides = array<i32>} : memref<1x1x128xf32, #tpu.memory_space<vmem>>, vector<1x1x128xf32>,
      %cst_23 = arith.constant 0.000000e+00 : f32
      %31 = vector.broadcast %cst_23 : f32 to vector<1x128xf32>
      %c0_24 = arith.constant 0 : index
      %c0_25 = arith.constant 0 : index
      %c0_26 = arith.constant 0 : index
      %32 = vector.load %arg5[%c0_24, %c0_25, %c0_26] : memref<1x1x128xf32, #tpu.memory_space<vmem>>, vector<1x1x128xf32>
      %33 = vector.shape_cast %32 : vector<1x1x128xf32> to vector<1x128xf32>
      %34 = vector.shape_cast %31 : vector<1x128xf32> to vector<1x1x128xf32>
      tpu.vector_store %arg5[%c0_24, %c0_25, %c0_26], %34 {strides = array<i32>} : memref<1x1x128xf32, #tpu.memory_space<vmem>>, vector<1x1x128xf32>,
    } else {
    }
    %c0 = arith.constant 0 : index
    %c0_1 = arith.constant 0 : index
    %c0_2 = arith.constant 0 : index
    %3 = vector.load %arg2[%c0, %c0_1, %c0_2] : memref<1x8x128xf32, #tpu.memory_space<vmem>>, vector<1x8x128xf32>
    %4 = vector.shape_cast %3 : vector<1x8x128xf32> to vector<8x128xf32>
    %c0_3 = arith.constant 0 : index
    %c0_4 = arith.constant 0 : index
    %c0_5 = arith.constant 0 : index
    %5 = vector.load %arg3[%c0_3, %c0_4, %c0_5] : memref<1x8x128xf32, #tpu.memory_space<vmem>>, vector<1x8x128xf32>
    %6 = vector.shape_cast %5 : vector<1x8x128xf32> to vector<8x128xf32>
    %c0_6 = arith.constant 0 : index
    %c0_7 = arith.constant 0 : index
    %c0_8 = arith.constant 0 : index
    %7 = vector.load %arg4[%c0_6, %c0_7, %c0_8] : memref<1x1x128xf32, #tpu.memory_space<vmem>>, vector<1x1x128xf32>
    %8 = vector.shape_cast %7 : vector<1x1x128xf32> to vector<1x128xf32>
    %9 = arith.mulf %4, %6 : vector<8x128xf32>
    %cst = arith.constant dense<0.000000e+00> : vector<128xf32>
    %10 = vector.multi_reduction <add>, %9, %cst [0] : vector<8x128xf32> to vector<128xf32>
    %11 = vector.shape_cast %10 : vector<128xf32> to vector<1x128xf32>
    %12 = arith.addf %8, %11 : vector<1x128xf32>
    %c0_9 = arith.constant 0 : index
    %c0_10 = arith.constant 0 : index
    %c0_11 = arith.constant 0 : index
    %13 = vector.load %arg4[%c0_9, %c0_10, %c0_11] : memref<1x1x128xf32, #tpu.memory_space<vmem>>, vector<1x1x128xf32>
    %14 = vector.shape_cast %13 : vector<1x1x128xf32> to vector<1x128xf32>
    %15 = vector.shape_cast %12 : vector<1x128xf32> to vector<1x1x128xf32>
    tpu.vector_store %arg4[%c0_9, %c0_10, %c0_11], %15 {strides = array<i32>} : memref<1x1x128xf32, #tpu.memory_space<vmem>>, vector<1x1x128xf32>,
    %c0_12 = arith.constant 0 : index
    %c0_13 = arith.constant 0 : index
    %c0_14 = arith.constant 0 : index
    %16 = vector.load %arg5[%c0_12, %c0_13, %c0_14] : memref<1x1x128xf32, #tpu.memory_space<vmem>>, vector<1x1x128xf32>
    %17 = vector.shape_cast %16 : vector<1x1x128xf32> to vector<1x128xf32>
    %18 = arith.mulf %4, %4 : vector<8x128xf32>
    %19 = arith.mulf %6, %6 : vector<8x128xf32>
    %20 = arith.addf %18, %19 : vector<8x128xf32>
    %cst_15 = arith.constant dense<0.000000e+00> : vector<128xf32>
    %21 = vector.multi_reduction <add>, %20, %cst_15 [0] : vector<8x128xf32> to vector<128xf32>
    %22 = vector.shape_cast %21 : vector<128xf32> to vector<1x128xf32>
    %23 = arith.addf %17, %22 : vector<1x128xf32>
    %c0_16 = arith.constant 0 : index
    %c0_17 = arith.constant 0 : index
    %c0_18 = arith.constant 0 : index
    %24 = vector.load %arg5[%c0_16, %c0_17, %c0_18] : memref<1x1x128xf32, #tpu.memory_space<vmem>>, vector<1x1x128xf32>
    %25 = vector.shape_cast %24 : vector<1x1x128xf32> to vector<1x128xf32>
    %26 = vector.shape_cast %23 : vector<1x128xf32> to vector<1x1x128xf32>
    tpu.vector_store %arg5[%c0_16, %c0_17, %c0_18], %26 {strides = array<i32>} : memref<1x1x128xf32, #tpu.memory_space<vmem>>, vector<1x1x128xf32>,
    return
  }
  func.func @transform_0(%arg0: i32, %arg1: i32) -> (i32, i32, i32) {
    %c0_i32 = arith.constant 0 : i32
    %c0_i32_0 = arith.constant 0 : i32
    return %arg0, %arg1, %c0_i32 : i32, i32, i32
  }
  func.func @transform_1(%arg0: i32, %arg1: i32) -> (i32, i32, i32) {
    %c0_i32 = arith.constant 0 : i32
    %c0_i32_0 = arith.constant 0 : i32
    return %arg0, %arg1, %c0_i32 : i32, i32, i32
  }
  func.func @transform_2(%arg0: i32, %arg1: i32) -> (i32, i32, i32) {
    %c0_i32 = arith.constant 0 : i32
    %c0_i32_0 = arith.constant 0 : i32
    %c0_i32_1 = arith.constant 0 : i32
    return %arg0, %c0_i32, %c0_i32_0 : i32, i32, i32
  }
  func.func @transform_3(%arg0: i32, %arg1: i32) -> (i32, i32, i32) {
    %c0_i32 = arith.constant 0 : i32
    %c0_i32_0 = arith.constant 0 : i32
    %c0_i32_1 = arith.constant 0 : i32
    return %arg0, %c0_i32, %c0_i32_0 : i32, i32, i32
  }
}

</mosaic_0001>

<bundles_post_ra>
// kernel: tpu_custom_call.1
= control target key start
LH: loop header
LB: loop body
LE: loop exit
PB: predicated region body
PF: predicated region fallthrough
CT: control target
= control target key end

     0   :  { %9 = vsyncpa [#allocation3], 0  ;;  %s937_s0 = inlined_call_operand.hbm [shape: f32[2,8,128], index: 0, kind: input, shape index: {}]   ;;  %s938_s1 = inlined_call_operand.hbm [shape: f32[2,8,128], index: 1, kind: input, shape index: {}]   ;;  %s939_s2 = inlined_call_operand.hbm [shape: f32[2,1,128], index: 2, kind: output, shape index: {0}]   ;;  %s940_s3 = inlined_call_operand.hbm [shape: f32[2,1,128], index: 3, kind: output, shape index: {1}]  }
   0x1   :  { %11 = vsyncpa [#allocation3 + $0x1], 0 }
   0x2   :  { %12 = vsyncpa [#allocation6], 0 }
   0x3   :  { %14 = vsyncpa [#allocation6 + $0x1], 0 }
   0x4   :  { %15 = vsyncpa [#allocation4], 0 }
   0x5   :  { %17 = vsyncpa [#allocation4 + $0x1], 0 }
   0x6   :  { %18 = vsyncpa [#allocation9], 0 }
   0x7   :  { %20 = vsyncpa [#allocation9 + $0x1], 0  ;;  %s722_s12 = smov 0   ;;  %s724_s13 = smov 0  }
   0x8   :  { %s726_s14 = smov 0   ;;  %s728_s15 = smov 0  }
   0x9   :  { %s730_s16 = smov 0   ;;  %s732_s17 = smov 0  }
   0xa LB: > { %s437_s18 = sadd.s32 4294967295, %s695_s17   ;;  %s438_s19 = sadd.s32 4294967294, %s695_s17   ;;  %s695_s17 = sphi %s732_s17, %s26_s17   ;;  %s691_s16 = sphi %s730_s16, %s952_s16   ;;  %s687_s15 = sphi %s728_s15, %s951_s15   ;;  %s683_s14 = sphi %s726_s14, %s950_s14   ;;  %s679_s13 = sphi %s724_s13, %s949_s13   ;;  %s675_s12 = sphi %s722_s12, %s948_s12  }
   0xb   : > { %s38_s20 = sadd.s32 1, %s691_s16  ;;  %s47_s21 = sadd.s32 1, %s683_s14 }
   0xc   : > { %p40_p0 = scmp.ge.s32.totalorder %s38_s20, 2  ;;  %p54_p1 = scmp.ne.s32.totalorder %s683_s14, %s679_s13 }
   0xd   : > { %p55_p2 = scmp.eq.s32.totalorder %s695_s17, 0  ;;  %p60_p3 = scmp.ne.s32.totalorder %s679_s13, %s675_s12 }
   0xe   : > { %s954_s20 = smov (%p40_p0, %s38_s20), 0  ;;  %p61_p5 = scmp.eq.s32.totalorder %s437_s18, 0 }
   0xf   : > { %p763_p4 = por %p55_p2, %p54_p1  ;;  %s42_s23 = ssub.s32 %s691_s16, %s954_s20 }
  0x10   : > { %p112_p6 = scmp.eq.s32.totalorder %s437_s18, 1  ;;  %p45_p7 = scmp.eq.s32.totalorder %s42_s23, 0 }
  0x11   : > { %p769_p8 = por %p61_p5, %p60_p3  ;;  %p118_p10 = scmp.eq.s32.totalorder %s438_s19, 1 }
  0x12   : > { %p773_p9 = por %p112_p6, %p54_p1  ;;  %p474_p13 = scmp.lt.s32.totalorder %s695_s17, 2 }
  0x13   : > { %s778_s26 = scalar_select %p45_p7, %s683_s14, %s47_s21  }
  0x14   : > { %p780_p11 = por %p118_p10, %p60_p3  ;;  %s787_s28 = sand.u32 1, %s683_s14  }
  0x15   : > { %s441_s29 = sshll.u32 %s787_s28, 3  ;;  %s442_s30 = sshll.u32 %s691_s16, 7 }
  0x16   : > { %s174_s6 = scalar_lea.hbm %s937_s0, %s442_s30  ;;  %s168_s7 = scalar_lea.vmem [#allocation2], %s441_s29 }
  0x17   : > { %s176_s8 = sshll.u32 %s168_s7, 4  ;;  %p796_p0 = pnand %p474_p13, %p763_p4  ;;  %s177_s8 = int_to_ptr.vmem [resolvable:$true] %s176_s8 }
  0x18   : > { %p445_p1 = scmp.ge.s32.totalorder %s695_s17, 1  ;;  %p200_p2 = scmp.lt.s32.totalorder %s695_s17, 3 }
  0x19   : > { %s165_s10 = scalar_lea.sflag [#allocation3], %s787_s28  ;;  %p527_p3 = pneg %p796_p0 }
  0x1a   : > { %s538_s11 = scalar_lea.vmem %s177_s8, 128  ;;  %s697_s18 = smov [#allocation2]  }
  0x1b   : > { %p539_p5 = scmp.ne.s32.totalorder %s177_s8, %s538_s11  ;;  %s543_s19 = sshll.u32 %s697_s18, 4  ;;  %s544_s19 = int_to_ptr.vmem [resolvable:$false] %s543_s19 }
  0x1c   : > { %s545_s21 = scalar_lea.vmem %s544_s19, 256  ;;  %p546_p4 = scmp.lt.s32.totalorder %s177_s8, %s544_s19 }
  0x1d   : > { %p541_p6 = pnand %p539_p5, %p527_p3  ;;  %p547_p10 = scmp.lt.s32.totalorder %s545_s21, %s538_s11 }
  0x1f   : > { %p542_p7 = pneg %p541_p6  ;;  %p548_p13 = por %p547_p10, %p546_p4 }
  0x21   : > { %p549_p12 = pnand %p548_p13, %p542_p7 }
  0x23   : > { %552 = shalt.err (!%p549_p12)
}
  0x24   : > { %463 = dma.hbm_to_vmem [thread:$0]  (!%p796_p0), %s174_s6, 128, %s177_s8, %s165_s10  }
  0x25   : > { %p814_p5 = pnand %p445_p1, %p200_p2  ;;  %s193_s5 = scalar_lea.hbm %s938_s1, %s442_s30 }
  0x26   : > { %s187_s7 = scalar_lea.vmem [#allocation5], %s441_s29  ;;  %s184_s18 = scalar_lea.sflag [#allocation6], %s787_s28 }
  0x27   : > { %s195_s11 = sshll.u32 %s187_s7, 4  ;;  %s698_s6 = smov [#allocation5]   ;;  %s196_s11 = int_to_ptr.vmem [resolvable:$true] %s195_s11 }
  0x28   : > { %s566_s19 = scalar_lea.vmem %s196_s11, 128  ;;  %s571_s8 = sshll.u32 %s698_s6, 4  ;;  %s572_s8 = int_to_ptr.vmem [resolvable:$false] %s571_s8 }
  0x29   : > { %p567_p12 = scmp.ne.s32.totalorder %s196_s11, %s566_s19  ;;  %s573_s10 = scalar_lea.vmem %s572_s8, 256 }
  0x2a   : > { %p574_p1 = scmp.lt.s32.totalorder %s196_s11, %s572_s8  ;;  %p575_p2 = scmp.lt.s32.totalorder %s573_s10, %s566_s19 }
  0x2b   : > { %p569_p6 = pnand %p567_p12, %p527_p3 }
  0x2c   : > { %p576_p4 = por %p575_p2, %p574_p1 }
  0x2d   : > { %p570_p7 = pneg %p569_p6 }
  0x2f   : > { %p577_p10 = pnand %p576_p4, %p570_p7 }
  0x31   : > { %580 = shalt.err (!%p577_p10)
}
  0x32   : > { %466 = dma.hbm_to_vmem [thread:$0]  (!%p796_p0), %s193_s5, 128, %s196_s11, %s184_s18  }
  0x33   : > { %204 = sbr.rel (%p814_p5) target bundleno = 111 (0x6f), region = 28  ;;  %s830_s28 = sand.u32 (!%p814_p5), 1, %s679_s13  }
  0x34   : > { %s446_s29 = sshll.u32 (!%p814_p5), %s830_s28, 3  ;;  %s207_s30 = scalar_lea.sflag (!%p814_p5), [#allocation3], %s830_s28 }
  0x35   : > { %s210_s21 = scalar_lea.vmem (!%p814_p5), [#allocation2], %s446_s29 }
  0x38   : > { %658 = dma.done.wait (%p769_p8), %s207_s30, 128  }
  0x39   : > { %660 = vsyncadd (%p769_p8), %s207_s30, 4294967168  ;;  %s216_s9 = scalar_lea.sflag [#allocation6], %s830_s28  ;;  %s219_s23 = scalar_lea.vmem [#allocation5], %s446_s29 }
  0x3a   : > { %662 = dma.done.wait (%p769_p8), %s216_s9, 128  }
  0x3b   : > { %664 = vsyncadd (%p769_p8), %s216_s9, 4294967168  ;;  %s844_s22 = scalar_lea.vmem [#allocation7], %s830_s28  ;;  %v699_v0 = vmov 0.0   ;;  %s848_s4 = scalar_lea.vmem [#allocation8], %s830_s28  ;;  %v256_v1 = vld [vmem:[%s210_s21] sm:$0xff]  ;;  %v257_v2 = vld [vmem:[%s219_s23] sm:$0xff] }
  0x3c   : > { %254 = vst [vmem:[%s844_s22] sm:$0x1] %v699_v0  ;;  %255 = vst [vmem:[%s848_s4] sm:$0x1] %v699_v0  ;;  %v259_v3 = vmul.f32 %v257_v2, %v256_v1  ;;  %v269_v4 = vmul.f32 %v256_v1, %v256_v1  ;;  %v270_v5 = vmul.f32 %v257_v2, %v257_v2  ;;  %s448_s24 = sshll.u32 %s687_s15, 4  ;;  %s297_s5 = sshll.u32 %s844_s22, 4  ;;  %s861_s5 = int_to_ptr.vmem [resolvable:$true] %s297_s5 }
  0x3d   : > { %s310_s7 = sshll.u32 %s848_s4, 4  ;;  %s859_s19 = scalar_lea.hbm %s939_s2, %s448_s24  ;;  %s869_s7 = int_to_ptr.vmem [resolvable:$true] %s310_s7 }
  0x3e   : > { %v260_v6 = vrot.slane %v259_v3, 4  ;;  %v271_v7 = vadd.f32 %v270_v5, %v269_v4  ;;  %s867_s8 = scalar_lea.hbm %s940_s3, %s448_s24  ;;  %s281_s10 = scalar_lea.sflag [#allocation4], %s830_s28 }
  0x3f   : > { %s581_s29 = scalar_lea.vmem %s861_s5, 16  ;;  %s700_s30 = smov [#allocation7]  }
  0x40   : > { %v261_v8 = vadd.f32 %v260_v6, %v259_v3  ;;  %v272_v9 = vrot.slane %v271_v7, 4  ;;  %p582_p8 = scmp.ne.s32.totalorder %s861_s5, %s581_s29  ;;  %s585_s21 = sshll.u32 %s700_s30, 4  ;;  %s586_s21 = int_to_ptr.vmem [resolvable:$false] %s585_s21 }
  0x41   : > { %s587_s9 = scalar_lea.vmem %s586_s21, 32  ;;  %p588_p13 = scmp.lt.s32.totalorder %s861_s5, %s586_s21 }
  0x42   : > { %v262_v10 = vrot.slane %v261_v8, 2  ;;  %v273_v11 = vadd.f32 %v272_v9, %v271_v7  ;;  %p583_p0 = pnand %p582_p8, %p773_p9  ;;  %p589_p5 = scmp.lt.s32.totalorder %s587_s9, %s581_s29 }
  0x43   : > { %v258_v16 = vld [vmem:[%s844_s22] sm:$0x1] }
  0x44   : > { %v263_v12 = vadd.f32 %v262_v10, %v261_v8  ;;  %v274_v13 = vrot.slane %v273_v11, 2  ;;  %v268_v19 = vld [vmem:[%s848_s4] sm:$0x1]  ;;  %p584_p3 = pneg %p583_p0  ;;  %p590_p12 = por %p589_p5, %p588_p13 }
  0x46   : > { %v264_v14 = vrot.slane %v263_v12, 1  ;;  %v275_v15 = vadd.f32 %v274_v13, %v273_v11  ;;  %p591_p6 = pnand %p590_p12, %p584_p3 }
  0x48   : > { %v265_v17 = vadd.f32 %v264_v14, %v263_v12  ;;  %v276_v18 = vrot.slane %v275_v15, 1 }
  0x4a   : > { %v266_v20 = vadd.f32 %v265_v17, %v258_v16  ;;  %v277_v21 = vadd.f32 %v276_v18, %v275_v15 }
  0x4c   : > { %267 = vst [vmem:[%s844_s22] sm:$0x1] %v266_v20  ;;  %v278_v22 = vadd.f32 %v277_v21, %v268_v19 }
  0x4d   : > { %594 = shalt.err (!%p591_p6)
}
  0x4e   : > { %s595_s23 = scalar_lea.hbm %s859_s19, 16  ;;  %s599_s11 = scalar_lea.hbm %s939_s2, 32 }
  0x4f   : > { %p596_p7 = scmp.ne.s32.totalorder %s859_s19, %s595_s23  ;;  %p600_p4 = scmp.lt.s32.totalorder %s859_s19, %s939_s2 }
  0x50   : > { %p601_p10 = scmp.lt.s32.totalorder %s599_s11, %s595_s23 }
  0x51   : > { %p597_p1 = pnand %p596_p7, %p773_p9 }
  0x52   : > { %p602_p8 = por %p601_p10, %p600_p4 }
  0x53   : > { %p598_p2 = pneg %p597_p1 }
  0x55   : > { %p603_p0 = pnand %p602_p8, %p598_p2 }
  0x57   : > { %606 = shalt.err (!%p603_p0)
}
  0x58   : > { %456 = dma.vmem_to_hbm [thread:$0]  (%p773_p9), %s861_s5, 16, %s859_s19, %s281_s10   ;;  %279 = vst [vmem:[%s848_s4] sm:$0x1] %v278_v22 }
  0x59   : > { %s285_s6 = scalar_lea.sflag [#allocation9], %s830_s28  ;;  %s607_s29 = scalar_lea.vmem %s869_s7, 16 }
  0x5a   : > { %p608_p3 = scmp.ne.s32.totalorder %s869_s7, %s607_s29  ;;  %s701_s30 = smov [#allocation8]  }
  0x5b   : > { %s611_s21 = sshll.u32 %s701_s30, 4  ;;  %s612_s21 = int_to_ptr.vmem [resolvable:$false] %s611_s21 }
  0x5c   : > { %p609_p13 = pnand %p608_p3, %p773_p9  ;;  %s613_s9 = scalar_lea.vmem %s612_s21, 32 }
  0x5d   : > { %p614_p12 = scmp.lt.s32.totalorder %s869_s7, %s612_s21  ;;  %p615_p6 = scmp.lt.s32.totalorder %s613_s9, %s607_s29 }
  0x5e   : > { %p610_p5 = pneg %p609_p13 }
  0x5f   : > { %p616_p7 = por %p615_p6, %p614_p12 }
  0x61   : > { %p617_p1 = pnand %p616_p7, %p610_p5 }
  0x63   : > { %620 = shalt.err (!%p617_p1)
}
  0x64   : > { %s621_s4 = scalar_lea.hbm %s867_s8, 16  ;;  %s625_s19 = scalar_lea.hbm %s940_s3, 32 }
  0x65   : > { %p622_p2 = scmp.ne.s32.totalorder %s867_s8, %s621_s4  ;;  %p626_p8 = scmp.lt.s32.totalorder %s867_s8, %s940_s3 }
  0x66   : > { %p627_p0 = scmp.lt.s32.totalorder %s625_s19, %s621_s4 }
  0x67   : > { %p623_p4 = pnand %p622_p2, %p773_p9 }
  0x68   : > { %p628_p3 = por %p627_p0, %p626_p8 }
  0x69   : > { %p624_p10 = pneg %p623_p4 }
  0x6b   : > { %p629_p13 = pnand %p628_p3, %p624_p10 }
  0x6d   : > { %632 = shalt.err (!%p629_p13)
}
  0x6e   : > { %457 = dma.vmem_to_hbm [thread:$0]  (%p773_p9), %s869_s7, 16, %s867_s8, %s285_s6  }
  0x6f PF: > { %s322_s22 = sand.u32 1, %s675_s12   ;;  %p947_p5 = scmp.ge.s32.totalorder %s695_s17, 2 }
  0x70   : > { %s323_s24 = scalar_lea.sflag [#allocation4], %s322_s22 }
  0x71   : > { %p468_p12 = pnand %p947_p5, %p780_p11 }
  0x73   : > { %p469_p6 = pneg %p468_p12 }
  0x75   : > { %666 = dma.done.wait (%p469_p6), %s323_s24, 16  }
  0x76   : > { %668 = vsyncadd (%p469_p6), %s323_s24, 4294967280  ;;  %s331_s11 = scalar_lea.sflag [#allocation9], %s322_s22 }
  0x77   : > { %670 = dma.done.wait (%p469_p6), %s331_s11, 16  }
  0x78   : > { %672 = vsyncadd (%p469_p6), %s331_s11, 4294967280  ;;  %s26_s17 = sadd.s32 1, %s695_s17   ;;  %s948_s12 = smov %s679_s13 }
  0x79   : > { %p23_p7 = scmp.ge.s32.totalorder %s26_s17, 4   ;;  %s949_s13 = smov %s683_s14 }
  0x7a   : > { %s950_s14 = smov %s778_s26  ;;  %s951_s15 = smov %s691_s16 }
  0x7b   : > { %s952_s16 = smov %s954_s20  ;;  %25 = sbr.rel (!%p23_p7) target bundleno = 10 (0xa), region = 107 }
  0x80   :  { %335 = vsyncpa [#allocation3], 1 }
  0x81   :  { %337 = vsyncpa [#allocation3 + $0x1], 1 }
  0x82   :  { %338 = vsyncpa [#allocation6], 1 }
  0x83   :  { %340 = vsyncpa [#allocation6 + $0x1], 1 }
  0x84   :  { %341 = vsyncpa [#allocation4], 1 }
  0x85   :  { %343 = vsyncpa [#allocation4 + $0x1], 1 }
  0x86   :  { %344 = vsyncpa [#allocation9], 1 }
  0x87   :  { %346 = vsyncpa [#allocation9 + $0x1], 1 }

</bundles_post_ra>
